<compile_context>
chip_gen: v6e
topology: v6e:2x2x1
jax: 0.10.0
libtpu: 0.0.40
codegen_flags: <defaults>
</compile_context>

<pallas_src>
import functools
import math

import jax
import jax.numpy as jnp
from jax.experimental import pallas as pl
from jax.experimental.pallas import tpu as pltpu

_LANE = 128


def _round_up(v, m):
    return (v + m - 1) // m * m


def _vmem_capacity():
    """Per-core VMEM capacity in bytes (trace-time query) plus a 'known' flag."""
    try:
        cap = int(pltpu.get_tpu_info().vmem_capacity_bytes)
        if cap > 0:
            return cap, True
    except Exception:
        pass
    return 64 * 1024 * 1024, False  # conservative fallback (v7x per-TC size)


def _vmem_estimate(tm, th, tn, k_pad, in_isz, out_isz, has_acc):
    """Approximate per-step VMEM footprint (double-buffered blocks + live values)."""
    dbl = 2                                   # BlockSpec double-buffering
    b = dbl * tm * k_pad * in_isz             # x row tile
    b += dbl * k_pad * th * in_isz            # W1 hidden chunk
    b += dbl * 8 * th * 4                     # b1 chunk (f32, sublane-padded)
    b += dbl * th * tn * in_isz               # W2 chunk
    b += dbl * 8 * tn * 4                     # b2 chunk
    b += dbl * tm * tn * out_isz              # output tile
    b += tm * th * 4                          # fc1 intermediate (f32)
    b += tm * th * in_isz                     # fc2 lhs cast copy
    if has_acc:
        b += tm * tn * 4                      # f32 accumulator scratch
    return b


def _pick_tile(dim, cap, fits):
    """Lane tile (multiple of 128) covering `dim` with minimal zero padding that
    fits the VMEM budget.  Prefers >=256 / multiples of 256 (MXU N dim on
    v6e/v7x).  Always returns something: the budget is a soft target — the
    caller's tm-shrinking loop handles overflow."""
    exact = _round_up(dim, _LANE)             # exact 128-aligned full coverage
    cands = set(range(256, cap + 1, 256))
    if exact <= cap:
        cands.add(exact)
    ok = [t for t in cands if fits(t)]
    if not ok:
        return _LANE if exact <= _LANE else 256   # never drop th below 256 for h>128
    # minimize padded size (wasted zero compute), then prefer the largest tile
    return min(ok, key=lambda t: (_round_up(dim, t), -t))


def _select_tiles(n, in_dim, h_dim, out_dim, in_isz, out_isz, has_acc, budget,
                  tm_req, th_req, tn_req, prefer_two_row_tiles):
    sub = max(8, 32 // in_isz)                # sublane tile: 8 f32 / 16 bf16 / 32 i8
    k_pad = _round_up(in_dim, _LANE)

    def est(tm, th, tn):
        return _vmem_estimate(tm, th, tn, k_pad, in_isz, out_isz, has_acc)

    tm = _round_up(tm_req if tm_req is not None else min(1024, _round_up(n, sub)), sub)
    tm_floor = min(tm, 128 if n >= 128 else _round_up(n, sub))
    th_floor = 256 if h_dim > _LANE else _LANE

    while True:
        tn = (_round_up(tn_req, _LANE) if tn_req is not None else
              _pick_tile(out_dim, 4096, lambda t: est(tm, th_floor, t) <= budget))
        th = (_round_up(th_req, _LANE) if th_req is not None else
              _pick_tile(h_dim, 4096, lambda t: est(tm, t, tn) <= budget))
        if est(tm, th, tn) <= budget or tm <= tm_floor or tm_req is not None:
            break
        tm = max(tm_floor, _round_up(tm // 2, sub))   # shrink rows, keep th/tn wide

    # Small-VMEM (v7x-class, 2 TensorCores): make sure the leading "parallel"
    # axis has at least two row tiles so both cores get work.
    if prefer_two_row_tiles and tm_req is None and n >= 256 and -(-n // tm) < 2:
        tm = max(128, _round_up(-(-n // 2), sub))

    return tm, th, tn, k_pad


def _pad2d(a, rows, cols):
    pr, pc = rows - a.shape[0], cols - a.shape[1]
    if pr == 0 and pc == 0:
        return a                              # skip the HBM copy when already aligned
    return jnp.pad(a, ((0, pr), (0, pc)))


# --------------------------------- kernels ----------------------------------
def _mlp_kernel_inplace(x_ref, w1_ref, b1_ref, w2_ref, b2_ref, o_ref):
    """f32 output: accumulate directly in the resident output block (no scratch)."""
    hk = pl.program_id(2)

    @pl.when(hk == 0)
    def _init():
        o_ref[...] = jnp.broadcast_to(b2_ref[...], o_ref.shape).astype(o_ref.dtype)

    h = jnp.dot(x_ref[...], w1_ref[...], preferred_element_type=jnp.float32)
    h = jnp.maximum(h + b1_ref[...], 0.0)     # fc1 bias + ReLU, exact per chunk
    # dropout(p=0.0, module default) -> identity
    o_ref[...] += jnp.dot(h.astype(w2_ref.dtype), w2_ref[...],
                          preferred_element_type=jnp.float32)


def _mlp_kernel_scratch(x_ref, w1_ref, b1_ref, w2_ref, b2_ref, o_ref, acc_ref):
    """Sub-f32 output: accumulate in a f32 VMEM scratch, cast on the last step."""
    hk = pl.program_id(2)

    @pl.when(hk == 0)
    def _init():
        acc_ref[...] = jnp.broadcast_to(b2_ref[...], acc_ref.shape).astype(jnp.float32)

    h = jnp.dot(x_ref[...], w1_ref[...], preferred_element_type=jnp.float32)
    h = jnp.maximum(h + b1_ref[...], 0.0)
    # dropout(p=0.0, module default) -> identity
    acc_ref[...] += jnp.dot(h.astype(w2_ref.dtype), w2_ref[...],
                            preferred_element_type=jnp.float32)

    @pl.when(hk == pl.num_programs(2) - 1)
    def _finalize():
        o_ref[...] = acc_ref[...].astype(o_ref.dtype)


# --------------------------------- wrapper ----------------------------------
@functools.partial(jax.jit, static_argnames=("tm", "th", "tn", "compute_dtype"))
def mlp_transformer(x, w1, b1, w2, b2, *, tm=None, th=None, tn=None,
                    compute_dtype=None):
    """out = fc2(relu(fc1(x))) over the last dim of x (PyTorch nn.Linear semantics,
    weights stored transposed: w1 (in_dim, h_dim), w2 (h_dim, out_dim)).
    compute_dtype=jnp.bfloat16 is an opt-in bandwidth/MXU optimization (e.g. v5e)."""
    in_dim = x.shape[-1]
    h_dim = w1.shape[1]
    out_dim = w2.shape[1]
    lead = x.shape[:-1]
    n = math.prod(lead) if lead else 1

    out_dtype = jnp.dtype(x.dtype)
    cdt = jnp.dtype(compute_dtype) if compute_dtype is not None else out_dtype
    in_isz = cdt.itemsize
    out_isz = out_dtype.itemsize
    use_inplace = out_dtype == jnp.dtype(jnp.float32)

    cap, known = _vmem_capacity()
    budget = int(cap * 0.75)              # ~96 MiB on v5e/v6e, ~48 MiB on v7x
    vmem_limit = int(cap * 0.85)          # headroom for Mosaic internal scratch
    small_vmem = known and cap <= 80 * 1024 * 1024   # v7x-class (2 TCs, 64 MiB each)

    tm_, th_, tn_, k_pad = _select_tiles(
        n, in_dim, h_dim, out_dim, in_isz, out_isz, not use_inplace, budget,
        tm, th, tn, prefer_two_row_tiles=small_vmem)

    n_pad = _round_up(n, tm_)
    h_pad = _round_up(h_dim, th_)         # th_ always divides h_pad (correctness fix)
    o_pad = _round_up(out_dim, tn_)       # tn_ always divides o_pad

    x2d = x.reshape(n, in_dim)
    w1c, w2c = w1, w2
    if compute_dtype is not None:
        x2d, w1c, w2c = x2d.astype(cdt), w1.astype(cdt), w2.astype(cdt)
    b1f = jnp.asarray(b1, jnp.float32).reshape(1, h_dim)
    b2f = jnp.asarray(b2, jnp.float32).reshape(1, out_dim)

    x2d = _pad2d(x2d, n_pad, k_pad)
    w1p = _pad2d(w1c, k_pad, h_pad)
    b1p = _pad2d(b1f, 1, h_pad)
    w2p = _pad2d(w2c, h_pad, o_pad)
    b2p = _pad2d(b2f, 1, o_pad)

    grid = (n_pad // tm_, o_pad // tn_, h_pad // th_)

    # Deeper weight multi-buffering only pays when row tiles are small (exposed
    # weight DMA) and the reduction axis is long enough to pipeline.
    w_kw = {"pipeline_mode": pl.Buffered(3)} if (tm_ <= 128 and grid[2] >= 4) else {}

    in_specs = [
        pl.BlockSpec((tm_, k_pad), lambda i, j, hk: (i, 0)),           # x row tile
        pl.BlockSpec((k_pad, th_), lambda i, j, hk: (0, hk), **w_kw),  # W1 chunk
        pl.BlockSpec((1, th_), lambda i, j, hk: (0, hk)),              # b1 chunk
        pl.BlockSpec((th_, tn_), lambda i, j, hk: (hk, j), **w_kw),    # W2 chunk
        pl.BlockSpec((1, tn_), lambda i, j, hk: (0, j)),               # b2 chunk
    ]
    out_spec = pl.BlockSpec((tm_, tn_), lambda i, j, hk: (i, j))

    kernel = _mlp_kernel_inplace if use_inplace else _mlp_kernel_scratch
    scratch = [] if use_inplace else [pltpu.VMEM((tm_, tn_), jnp.float32)]

    cost = pl.CostEstimate(
        flops=int(2 * n * (in_dim * h_dim + h_dim * out_dim)),
        bytes_accessed=int((x.size + w1.size + w2.size) * in_isz
                           + (h_dim + out_dim) * 4 + n * out_dim * out_isz),
        transcendentals=0,
    )

    out2d = pl.pallas_call(
        kernel,
        out_shape=jax.ShapeDtypeStruct((n_pad, o_pad), out_dtype),
        grid_spec=pltpu.PrefetchScalarGridSpec(
            num_scalar_prefetch=0,
            grid=grid,
            in_specs=in_specs,
            out_specs=out_spec,
            scratch_shapes=scratch,
        ),
        compiler_params=pltpu.CompilerParams(
            dimension_semantics=("parallel", "parallel", "arbitrary"),
            vmem_limit_bytes=vmem_limit,
        ),
        cost_estimate=cost,
    )(x2d, w1p, b1p, w2p, b2p)

    return out2d[:n, :out_dim].reshape(*lead, out_dim)


def init_params(key, in_dim, h_dim, out_dim, dtype=jnp.float32):
    """Deterministic init mimicking PyTorch nn.Linear defaults (U(+/- 1/sqrt(fan_in)))."""
    k1, k2, k3, k4 = jax.random.split(key, 4)
    lim1 = 1.0 / (in_dim ** 0.5)
    lim2 = 1.0 / (h_dim ** 0.5)
    w1 = jax.random.uniform(k1, (in_dim, h_dim), dtype, -lim1, lim1)
    b1 = jax.random.uniform(k2, (1, h_dim), dtype, -lim1, lim1)
    w2 = jax.random.uniform(k3, (h_dim, out_dim), dtype, -lim2, lim2)
    b2 = jax.random.uniform(k4, (1, out_dim), dtype, -lim2, lim2)
    return w1, b1, w2, b2


if __name__ == "__main__":
    # Small shapes consistent with MlpTransformer(in_dim=32, h_dim=64) (out_d=None -> in_dim).
    batch, seq, in_dim, h_dim = 2, 8, 32, 64
    out_dim = in_dim

    key = jax.random.PRNGKey(0)
    kx, kp = jax.random.split(key)
    x = jax.random.normal(kx, (batch, seq, in_dim), jnp.float32)
    w1, b1, w2, b2 = init_params(kp, in_dim, h_dim, out_dim)

    out = jax.block_until_ready(mlp_transformer(x, w1, b1, w2, b2))
    ref = jnp.maximum(x @ w1 + b1[0], 0.0) @ w2 + b2[0]
    assert out.shape == (batch, seq, out_dim)
    assert jnp.allclose(out, ref, atol=1e-5, rtol=1e-5)

    # Multi-step grid (rows x out-cols x hidden-chunks): exercises the f32
    # accumulate-in-output path with a (2, 2, 4) grid.
    bb, ss, dd, hh = 2, 256, 256, 1024
    kx2, kp2 = jax.random.split(jax.random.PRNGKey(1))
    x_big = jax.random.normal(kx2, (bb, ss, dd), jnp.float32)
    wp = init_params(kp2, dd, hh, dd)
    out_big = jax.block_until_ready(
        mlp_transformer(x_big, *wp, tm=256, th=256, tn=128))
    ref_h = jnp.maximum(
        jnp.dot(x_big, wp[0], precision=jax.lax.Precision.HIGHEST) + wp[1][0], 0.0)
    ref_big = jnp.dot(ref_h, wp[2], precision=jax.lax.Precision.HIGHEST) + wp[3][0]
    assert out_big.shape == (bb, ss, dd)
    assert jnp.allclose(out_big, ref_big, atol=2e-2, rtol=2e-2)

    # bf16 inputs -> sub-f32 output path (f32 VMEM scratch accumulator kernel).
    out_bf = jax.block_until_ready(
        mlp_transformer(x_big.astype(jnp.bfloat16),
                        wp[0].astype(jnp.bfloat16), wp[1].astype(jnp.bfloat16),
                        wp[2].astype(jnp.bfloat16), wp[3].astype(jnp.bfloat16),
                        tm=256, th=256, tn=128))
    assert out_bf.dtype == jnp.bfloat16
    assert jnp.allclose(out_bf.astype(jnp.float32), ref_big, atol=8e-2, rtol=8e-2)

    print("KERNEL_OK")
</pallas_src>

<mosaic_0001>
module attributes {stable_mosaic.version = 11 : i64} {
  func.func @_mlp_kernel_inplace(%arg0: i32, %arg1: i32, %arg2: i32, %arg3: memref<16x128xf32, #tpu.memory_space<vmem>>, %arg4: memref<128x128xf32, #tpu.memory_space<vmem>>, %arg5: memref<1x128xf32, #tpu.memory_space<vmem>>, %arg6: memref<128x128xf32, #tpu.memory_space<vmem>>, %arg7: memref<1x128xf32, #tpu.memory_space<vmem>>, %arg8: memref<16x128xf32, #tpu.memory_space<vmem>>) attributes {dimension_semantics = [#tpu.dimension_semantics<parallel>, #tpu.dimension_semantics<parallel>, #tpu.dimension_semantics<arbitrary>], iteration_bounds = array<i64: 1, 1, 1>, scalar_prefetch = 0 : i64, scratch_operands = 0 : i64, tpu.core_type = #tpu.core_type<tc>, window_params = [{transform_indices = @transform_0, window_bounds = array<i64: 16, 128>}, {transform_indices = @transform_1, window_bounds = array<i64: 128, 128>}, {transform_indices = @transform_2, window_bounds = array<i64: 1, 128>}, {transform_indices = @transform_3, window_bounds = array<i64: 128, 128>}, {transform_indices = @transform_4, window_bounds = array<i64: 1, 128>}, {transform_indices = @transform_5, window_bounds = array<i64: 16, 128>}]} {
    %c0_i32 = arith.constant 0 : i32
    %0 = arith.cmpi eq, %arg2, %c0_i32 : i32
    %1 = arith.extui %0 : i1 to i32
    %c0_i32_0 = arith.constant 0 : i32
    %2 = arith.cmpi ne, %1, %c0_i32_0 : i32
    scf.if %2 {
      %c0_14 = arith.constant 0 : index
      %c0_15 = arith.constant 0 : index
      %16 = vector.load %arg7[%c0_14, %c0_15] : memref<1x128xf32, #tpu.memory_space<vmem>>, vector<1x128xf32>
      %17 = vector.shape_cast %16 : vector<1x128xf32> to vector<1x128xf32>
      %18 = vector.broadcast %17 : vector<1x128xf32> to vector<16x128xf32>
      %c0_16 = arith.constant 0 : index
      %c0_17 = arith.constant 0 : index
      %19 = vector.load %arg8[%c0_16, %c0_17] : memref<16x128xf32, #tpu.memory_space<vmem>>, vector<16x128xf32>
      tpu.vector_store %arg8[%c0_16, %c0_17], %18 {strides = array<i32>} : memref<16x128xf32, #tpu.memory_space<vmem>>, vector<16x128xf32>,
    } else {
    }
    %c0 = arith.constant 0 : index
    %c0_1 = arith.constant 0 : index
    %3 = vector.load %arg3[%c0, %c0_1] : memref<16x128xf32, #tpu.memory_space<vmem>>, vector<16x128xf32>
    %c0_2 = arith.constant 0 : index
    %c0_3 = arith.constant 0 : index
    %4 = vector.load %arg4[%c0_2, %c0_3] : memref<128x128xf32, #tpu.memory_space<vmem>>, vector<128x128xf32>
    %cst = arith.constant dense<0.000000e+00> : vector<16x128xf32>
    %5 = tpu.matmul %3, %4, %cst {dimension_numbers = #tpu.dot_dimension_numbers<[1], [0], [0], [1], [0, 0, 1, 1], [], []>} : vector<16x128xf32>, vector<128x128xf32>, vector<16x128xf32> -> vector<16x128xf32>
    %c0_4 = arith.constant 0 : index
    %c0_5 = arith.constant 0 : index
    %6 = vector.load %arg5[%c0_4, %c0_5] : memref<1x128xf32, #tpu.memory_space<vmem>>, vector<1x128xf32>
    %7 = vector.broadcast %6 : vector<1x128xf32> to vector<16x128xf32>
    %8 = arith.addf %5, %7 : vector<16x128xf32>
    %cst_6 = arith.constant 0.000000e+00 : f32
    %9 = vector.broadcast %cst_6 : f32 to vector<16x128xf32>
    %10 = arith.maximumf %8, %9 : vector<16x128xf32>
    %c0_7 = arith.constant 0 : index
    %c0_8 = arith.constant 0 : index
    %11 = vector.load %arg8[%c0_7, %c0_8] : memref<16x128xf32, #tpu.memory_space<vmem>>, vector<16x128xf32>
    %c0_9 = arith.constant 0 : index
    %c0_10 = arith.constant 0 : index
    %12 = vector.load %arg6[%c0_9, %c0_10] : memref<128x128xf32, #tpu.memory_space<vmem>>, vector<128x128xf32>
    %cst_11 = arith.constant dense<0.000000e+00> : vector<16x128xf32>
    %13 = tpu.matmul %10, %12, %cst_11 {dimension_numbers = #tpu.dot_dimension_numbers<[1], [0], [0], [1], [0, 0, 1, 1], [], []>} : vector<16x128xf32>, vector<128x128xf32>, vector<16x128xf32> -> vector<16x128xf32>
    %14 = arith.addf %11, %13 : vector<16x128xf32>
    %c0_12 = arith.constant 0 : index
    %c0_13 = arith.constant 0 : index
    %15 = vector.load %arg8[%c0_12, %c0_13] : memref<16x128xf32, #tpu.memory_space<vmem>>, vector<16x128xf32>
    tpu.vector_store %arg8[%c0_12, %c0_13], %14 {strides = array<i32>} : memref<16x128xf32, #tpu.memory_space<vmem>>, vector<16x128xf32>,
    return
  }
  func.func @transform_0(%arg0: i32, %arg1: i32, %arg2: i32) -> (i32, i32) {
    %c0_i32 = arith.constant 0 : i32
    %c0_i32_0 = arith.constant 0 : i32
    return %arg0, %c0_i32 : i32, i32
  }
  func.func @transform_1(%arg0: i32, %arg1: i32, %arg2: i32) -> (i32, i32) {
    %c0_i32 = arith.constant 0 : i32
    %c0_i32_0 = arith.constant 0 : i32
    return %c0_i32, %arg2 : i32, i32
  }
  func.func @transform_2(%arg0: i32, %arg1: i32, %arg2: i32) -> (i32, i32) {
    %c0_i32 = arith.constant 0 : i32
    %c0_i32_0 = arith.constant 0 : i32
    return %c0_i32, %arg2 : i32, i32
  }
  func.func @transform_3(%arg0: i32, %arg1: i32, %arg2: i32) -> (i32, i32) {
    %c0_i32 = arith.constant 0 : i32
    return %arg2, %arg1 : i32, i32
  }
  func.func @transform_4(%arg0: i32, %arg1: i32, %arg2: i32) -> (i32, i32) {
    %c0_i32 = arith.constant 0 : i32
    %c0_i32_0 = arith.constant 0 : i32
    return %c0_i32, %arg1 : i32, i32
  }
  func.func @transform_5(%arg0: i32, %arg1: i32, %arg2: i32) -> (i32, i32) {
    %c0_i32 = arith.constant 0 : i32
    return %arg0, %arg1 : i32, i32
  }
}

</mosaic_0001>

<bundles_post_ra>
// kernel: mlp_transformer.1
= control target key start
LH: loop header
LB: loop body
LE: loop exit
PB: predicated region body
PF: predicated region fallthrough
CT: control target
= control target key end

     0   :  { %s488_s1 = inlined_call_operand.vmem [shape: f32[128,128], index: 1, kind: input, shape index: {}]   ;;  %s489_s0 = inlined_call_operand.vmem [shape: f32[16,128], index: 0, kind: input, shape index: {}]   ;;  %s490_s3 = inlined_call_operand.vmem [shape: f32[128,128], index: 3, kind: input, shape index: {}]   ;;  %s491_s2 = inlined_call_operand.vmem [shape: f32[1,128], index: 2, kind: input, shape index: {}]   ;;  %s492_s4 = inlined_call_operand.vmem [shape: f32[1,128], index: 4, kind: input, shape index: {}]   ;;  %s493_s5 = inlined_call_operand.vmem [shape: f32[16,128], index: 5, kind: output, shape index: {}]  }
   0x1   :  { %v50_v0 = vld [vmem:[%s488_s1 + $0x78] sm:$0xff]  ;;  %v49_v1 = vld [vmem:[%s488_s1 + $0x70] sm:$0xff]  ;;  %v48_v2 = vld [vmem:[%s488_s1 + $0x68] sm:$0xff] }
   0x2   :  { %274 = vmatprep.subr.mxu0 %v50_v0  ;;  %v47_v3 = vld [vmem:[%s488_s1 + $0x60] sm:$0xff]  ;;  %v46_v5 = vld [vmem:[%s488_s1 + $0x58] sm:$0xff]  ;;  %v151_v7 = vld [vmem:[%s490_s3 + $0x70] sm:$0xff] }
   0x3   :  { %275 = vmatpush3.msra.mxu0 %v50_v0  ;;  %v33_v4 = vld [vmem:[%s489_s0] sm:$0xff]  ;;  %v152_v6 = vld [vmem:[%s490_s3 + $0x78] sm:$0xff]  ;;  %v45_v8 = vld [vmem:[%s488_s1 + $0x50] sm:$0xff] }
   0x4   :  { %276 = vmatprep.subr.mxu0 %v49_v1  ;;  %306 = vmatprep.mubr.f32.mxu0 %v33_v4  ;;  %v150_v9 = vld [vmem:[%s490_s3 + $0x68] sm:$0xff]  ;;  %v149_v11 = vld [vmem:[%s490_s3 + $0x60] sm:$0xff]  ;;  %v148_v13 = vld [vmem:[%s490_s3 + $0x58] sm:$0xff] }
   0x5   :  { %277 = vmatpush3.msra.mxu0 %v49_v1  ;;  %309 = vmatprep.subr.mxu1 %v152_v6  ;;  %v44_v10 = vld [vmem:[%s488_s1 + $0x48] sm:$0xff]  ;;  %v43_v12 = vld [vmem:[%s488_s1 + $0x40] sm:$0xff]  ;;  %v42_v14 = vld [vmem:[%s488_s1 + $0x38] sm:$0xff] }
   0x6   :  { %278 = vmatprep.subr.mxu0 %v48_v2  ;;  %310 = vmatpush3.msra.mxu1 %v152_v6  ;;  %v147_v15 = vld [vmem:[%s490_s3 + $0x50] sm:$0xff]  ;;  %v146_v17 = vld [vmem:[%s490_s3 + $0x48] sm:$0xff]  ;;  %v145_v19 = vld [vmem:[%s490_s3 + $0x40] sm:$0xff] }
   0x7   :  { %279 = vmatpush3.msra.mxu0 %v48_v2  ;;  %311 = vmatprep.subr.mxu1 %v151_v7  ;;  %v41_v16 = vld [vmem:[%s488_s1 + $0x30] sm:$0xff]  ;;  %v40_v18 = vld [vmem:[%s488_s1 + $0x28] sm:$0xff]  ;;  %v39_v20 = vld [vmem:[%s488_s1 + $0x20] sm:$0xff] }
   0x8   :  { %280 = vmatprep.subr.mxu0 %v47_v3  ;;  %312 = vmatpush3.msra.mxu1 %v151_v7  ;;  %v144_v21 = vld [vmem:[%s490_s3 + $0x38] sm:$0xff]  ;;  %v143_v23 = vld [vmem:[%s490_s3 + $0x30] sm:$0xff]  ;;  %v142_v25 = vld [vmem:[%s490_s3 + $0x28] sm:$0xff] }
   0x9   :  { %281 = vmatpush3.msra.mxu0 %v47_v3  ;;  %313 = vmatprep.subr.mxu1 %v150_v9  ;;  %v38_v22 = vld [vmem:[%s488_s1 + $0x18] sm:$0xff]  ;;  %v37_v24 = vld [vmem:[%s488_s1 + $0x10] sm:$0xff]  ;;  %v36_v26 = vld [vmem:[%s488_s1 + $0x8] sm:$0xff] }
   0xa   :  { %282 = vmatprep.subr.mxu0 %v46_v5  ;;  %314 = vmatpush3.msra.mxu1 %v150_v9  ;;  %v141_v27 = vld [vmem:[%s490_s3 + $0x20] sm:$0xff]  ;;  %v34_v29 = vld [vmem:[%s489_s0 + $0x8] sm:$0xff]  ;;  %v140_v30 = vld [vmem:[%s490_s3 + $0x18] sm:$0xff] }
   0xb   :  { %283 = vmatpush3.msra.mxu0 %v46_v5  ;;  %315 = vmatprep.subr.mxu1 %v149_v11  ;;  %v35_v28 = vld [vmem:[%s488_s1] sm:$0xff]  ;;  %v139_v31 = vld [vmem:[%s490_s3 + $0x10] sm:$0xff]  ;;  %v138_v32 = vld [vmem:[%s490_s3 + $0x8] sm:$0xff] }
   0xc   :  { %284 = vmatprep.subr.mxu0 %v45_v8  ;;  %316 = vmatpush3.msra.mxu1 %v149_v11  ;;  %v137_v33 = vld [vmem:[%s490_s3] sm:$0xff] }
   0xd   :  { %285 = vmatpush3.msra.mxu0 %v45_v8  ;;  %317 = vmatprep.subr.mxu1 %v148_v13  ;;  %v237_v34 = vld [vmem:[%s491_s2] ss:$0 sm:$0xff] }
   0xe   :  { %286 = vmatprep.subr.mxu0 %v44_v10  ;;  %318 = vmatpush3.msra.mxu1 %v148_v13  ;;  %v236_v41 = vld [vmem:[%s492_s4] ss:$0 sm:$0xff] }
   0xf   :  { %287 = vmatpush3.msra.mxu0 %v44_v10  ;;  %319 = vmatprep.subr.mxu1 %v147_v15 }
  0x10   :  { %288 = vmatprep.subr.mxu0 %v43_v12  ;;  %320 = vmatpush3.msra.mxu1 %v147_v15 }
  0x11   :  { %289 = vmatpush3.msra.mxu0 %v43_v12  ;;  %321 = vmatprep.subr.mxu1 %v146_v17 }
  0x12   :  { %290 = vmatprep.subr.mxu0 %v42_v14  ;;  %322 = vmatpush3.msra.mxu1 %v146_v17 }
  0x13   :  { %291 = vmatpush3.msra.mxu0 %v42_v14  ;;  %323 = vmatprep.subr.mxu1 %v145_v19 }
  0x14   :  { %292 = vmatprep.subr.mxu0 %v41_v16  ;;  %324 = vmatpush3.msra.mxu1 %v145_v19 }
  0x15   :  { %293 = vmatpush3.msra.mxu0 %v41_v16  ;;  %325 = vmatprep.subr.mxu1 %v144_v21 }
  0x16   :  { %294 = vmatprep.subr.mxu0 %v40_v18  ;;  %326 = vmatpush3.msra.mxu1 %v144_v21 }
  0x17   :  { %295 = vmatpush3.msra.mxu0 %v40_v18  ;;  %327 = vmatprep.subr.mxu1 %v143_v23 }
  0x18   :  { %296 = vmatprep.subr.mxu0 %v39_v20  ;;  %328 = vmatpush3.msra.mxu1 %v143_v23 }
  0x19   :  { %297 = vmatpush3.msra.mxu0 %v39_v20  ;;  %329 = vmatprep.subr.mxu1 %v142_v25 }
  0x1a   :  { %298 = vmatprep.subr.mxu0 %v38_v22  ;;  %330 = vmatpush3.msra.mxu1 %v142_v25 }
  0x1b   :  { %299 = vmatpush3.msra.mxu0 %v38_v22  ;;  %331 = vmatprep.subr.mxu1 %v141_v27 }
  0x1c   :  { %300 = vmatprep.subr.mxu0 %v37_v24  ;;  %332 = vmatpush3.msra.mxu1 %v141_v27 }
  0x1d   :  { %301 = vmatpush3.msra.mxu0 %v37_v24  ;;  %333 = vmatprep.subr.mxu1 %v140_v30 }
  0x1e   :  { %302 = vmatprep.subr.mxu0 %v36_v26  ;;  %334 = vmatpush3.msra.mxu1 %v140_v30 }
  0x1f   :  { %303 = vmatpush3.msra.mxu0 %v36_v26  ;;  %335 = vmatprep.subr.mxu1 %v139_v31 }
  0x20   :  { %304 = vmatprep.subr.mxu0 %v35_v28  ;;  %336 = vmatpush3.msra.mxu1 %v139_v31 }
  0x21   :  { %305 = vmatpush3.msra.mxu0 %v35_v28  ;;  %337 = vmatprep.subr.mxu1 %v138_v32 }
  0x22   :  { %307 = vmatmul.mubr.f32.vlgmr.msra.gmra.mxu0 %v34_v29  ;;  %338 = vmatpush3.msra.mxu1 %v138_v32 }
  0x23   :  { %339 = vmatprep.subr.mxu1 %v137_v33 }
  0x24   :  { %340 = vmatpush3.msra.mxu1 %v137_v33 }
  0xe2   :  { %v308_v35 = vpop.f32.mrf.mxu0 }
  0xe3   :  { %v130_v36 = vadd.f32 %v308_v35, %v237_v34 }
  0xe4   :  { %v124_v37 = vpop.f32.mrf.mxu0 }
  0xe5   :  { %v125_v38 = vadd.f32 %v237_v34, %v124_v37  ;;  %v134_v40 = vmax.f32 %v130_v36, 0.0 }
  0xe7   :  { %v133_v39 = vmax.f32 %v125_v38, 0.0 }
  0xe9   :  { %341 = vmatprep.mubr.f32.mxu1 %v133_v39 }
  0xea   :  { %342 = vmatmul.mubr.f32.vlgmr.msra.gmra.mxu1 %v134_v40 }
 0x1aa   :  { %v343_v42 = vpop.f32.mrf.mxu1 }
 0x1ab   :  { %v229_v43 = vadd.f32 %v343_v42, %v236_v41 }
 0x1ac   :  { %v219_v44 = vpop.f32.mrf.mxu1 }
 0x1ad   :  { %231 = vst [vmem:[%s493_s5 + $0x8] sm:$0xff] %v229_v43  ;;  %v228_v45 = vadd.f32 %v236_v41, %v219_v44 }
 0x1af   :  { %230 = vst [vmem:[%s493_s5] sm:$0xff] %v228_v45 }

</bundles_post_ra>
